<compile_context>
chip_gen: v7x
topology: tpu7x:2x2x1
jax: 0.10.0
libtpu: 0.0.40
codegen_flags: <defaults>
</compile_context>

<pallas_src>
import math
import functools

import jax
import jax.numpy as jnp
from jax.experimental import pallas as pl
from jax.experimental.pallas import tpu as pltpu

_BN_EPS = 1e-5
_LEAKY = 0.1

# ---------------------------------------------------------------------------
# Generation-aware VMEM budget (v7x: 64 MiB/TC, v5e/v6e: 128 MiB).
# ---------------------------------------------------------------------------
try:
    _VMEM_CAP = int(getattr(pltpu.get_tpu_info(), "vmem_capacity_bytes",
                            128 * 1024 * 1024))
except Exception:  # pragma: no cover - defensive fallback
    _VMEM_CAP = 128 * 1024 * 1024
_VMEM_LIMIT = min(_VMEM_CAP // 2, 96 * 1024 * 1024)


# ---------------------------------------------------------------------------
# Pallas kernel: tiled matmul + fused bias + LeakyReLU + residual epilogue
# ---------------------------------------------------------------------------
def _conv_mm_kernel(x_ref, w_ref, b_ref, *rest, apply_act, has_res):
    if has_res:
        res_ref, out_ref, acc_ref = rest
    else:
        out_ref, acc_ref = rest

    k = pl.program_id(2)

    @pl.when(k == 0)
    def _():
        acc_ref[...] = jnp.zeros_like(acc_ref)

    # bf16 x bf16 -> f32 accumulation on the MXU.
    acc_ref[...] += jnp.dot(
        x_ref[...], w_ref[...], preferred_element_type=jnp.float32
    )

    @pl.when(k == pl.num_programs(2) - 1)
    def _():
        y = acc_ref[...] + b_ref[...]                     # folded BN / conv bias
        if apply_act:
            y = jnp.where(y > 0, y, jnp.float32(_LEAKY) * y)   # LeakyReLU(0.1)
        if has_res:
            y = y + res_ref[...]                          # fused residual add
        out_ref[...] = y.astype(out_ref.dtype)


def _round_up(v, m):
    return ((v + m - 1) // m) * m


def _pick_tile(size, align, cap):
    """Return (tile, padded_size): tile % align == 0 and padded % tile == 0."""
    padded = _round_up(size, align)
    if padded <= cap:
        return padded, padded
    t = cap
    while t >= align:
        if padded % t == 0:
            return t, padded
        t -= align
    return cap, _round_up(padded, cap)


def fused_conv_matmul(x2d, w2d, bias, res2d=None, apply_act=True):
    """out = act(x2d @ w2d + bias) [+ res2d] via a tiled (M, N, K) Pallas matmul.

    x2d: (M, K) f32, w2d: (K, Cout) f32 (BN scale already folded),
    bias: (1, Cout) f32, res2d: optional (M, Cout) f32.
    Operands are cast to bf16 for the MXU; accumulation + epilogue stay f32.
    """
    M, K = x2d.shape
    Cout = w2d.shape[1]

    tm, Mp = _pick_tile(M, 8, 256)       # sublane-aligned M tiles
    tn, Np = _pick_tile(Cout, 128, 256)  # lane-dense, MXU-wide output tiles
    tk, Kp = _pick_tile(K, 128, 512)     # deep K tiles for the 256x256 MXU

    def pad2(a, rows, cols, dtype):
        a = a.astype(dtype)
        dr, dc = rows - a.shape[0], cols - a.shape[1]
        if dr or dc:
            a = jnp.pad(a, ((0, dr), (0, dc)))
        return a

    xb = pad2(x2d, Mp, Kp, jnp.bfloat16)
    wb = pad2(w2d, Kp, Np, jnp.bfloat16)
    bb = pad2(bias.reshape(1, Cout), 1, Np, jnp.float32)

    inputs = [xb, wb, bb]
    in_specs = [
        pl.BlockSpec((tm, tk), lambda i, j, k: (i, k)),
        pl.BlockSpec((tk, tn), lambda i, j, k: (k, j)),
        pl.BlockSpec((1, tn), lambda i, j, k: (0, j)),
    ]
    has_res = res2d is not None
    if has_res:
        inputs.append(pad2(res2d, Mp, Np, jnp.float32))
        in_specs.append(pl.BlockSpec((tm, tn), lambda i, j, k: (i, j)))

    kernel = functools.partial(
        _conv_mm_kernel, apply_act=apply_act, has_res=has_res
    )

    bytes_accessed = (
        Mp * Kp * 2 + Kp * Np * 2 + Np * 4 + Mp * Np * 4
        + (Mp * Np * 4 if has_res else 0)
    )

    out_padded = pl.pallas_call(
        kernel,
        out_shape=jax.ShapeDtypeStruct((Mp, Np), jnp.float32),
        grid=(Mp // tm, Np // tn, Kp // tk),
        in_specs=in_specs,
        out_specs=pl.BlockSpec((tm, tn), lambda i, j, k: (i, j)),
        scratch_shapes=[pltpu.VMEM((tm, tn), jnp.float32)],
        compiler_params=pltpu.CompilerParams(
            dimension_semantics=("parallel", "parallel", "arbitrary"),
            vmem_limit_bytes=_VMEM_LIMIT,
        ),
        cost_estimate=pl.CostEstimate(
            flops=2 * Mp * Kp * Np,
            transcendentals=0,
            bytes_accessed=bytes_accessed,
        ),
    )(*inputs)

    return out_padded[:M, :Cout]


# ---------------------------------------------------------------------------
# Conv glue (im2col, reshapes)
# ---------------------------------------------------------------------------
# TODO(synk): patch extraction is still JAX-side im2col (9x HBM inflation for 3x3
# convs); in-kernel window accumulation over (ky, kx) is not implemented.
def _im2col(x, k, stride, pad):
    """x: (N, H, W, C) -> ((N*Ho*Wo, k*k*C), (N, Ho, Wo)); row order (ky, kx, c)."""
    if pad:
        x = jnp.pad(x, ((0, 0), (pad, pad), (pad, pad), (0, 0)))
    N, Hp, Wp, C = x.shape
    Ho = (Hp - k) // stride + 1
    Wo = (Wp - k) // stride + 1
    cols = []
    for ky in range(k):
        for kx in range(k):
            cols.append(
                x[:, ky:ky + stride * Ho:stride, kx:kx + stride * Wo:stride, :]
            )
    patches = jnp.concatenate(cols, axis=-1)
    return patches.reshape(N * Ho * Wo, k * k * C), (N, Ho, Wo)


def conv_forward(x, p, stride=1, residual=None, apply_act=True):
    k = p["k"]
    pad = (k - 1) // 2
    x2d, (N, Ho, Wo) = _im2col(x, k, stride, pad)
    Cout = p["w"].shape[-1]
    # Fold the (eval-mode) BN scale into the weights; only the bias add remains
    # in the kernel epilogue.
    w2d = p["w"].reshape(-1, Cout) * p["scale"]
    res2d = residual.reshape(N * Ho * Wo, Cout) if residual is not None else None
    out2d = fused_conv_matmul(
        x2d, w2d, p["bias"], res2d=res2d, apply_act=apply_act
    )
    return out2d.reshape(N, Ho, Wo, Cout)


def upsample2x(x):
    x = jnp.repeat(x, 2, axis=1)
    return jnp.repeat(x, 2, axis=2)


# ---------------------------------------------------------------------------
# Deterministic parameter construction (mirrors module __init__ shapes)
# ---------------------------------------------------------------------------
class _ParamGen:
    def __init__(self, key):
        self._key = key
        self._i = 0

    def _next(self):
        self._i += 1
        return jax.random.fold_in(self._key, self._i)

    def conv_bn(self, cin, cout, k):
        n = k * k * cout
        w = jax.random.normal(self._next(), (k, k, cin, cout), jnp.float32)
        w = w * math.sqrt(2.0 / n)
        # BN (eval mode, default stats) folded: scale = gamma/sqrt(var+eps), bias = beta
        scale = jnp.full((1, cout), 1.0 / math.sqrt(1.0 + _BN_EPS), jnp.float32)
        bias = jnp.zeros((1, cout), jnp.float32)
        return dict(w=w, scale=scale, bias=bias, k=k)

    def conv_bias(self, cin, cout, k):
        n = k * k * cout
        w = jax.random.normal(self._next(), (k, k, cin, cout), jnp.float32)
        w = w * math.sqrt(2.0 / n)
        b = 0.01 * jax.random.normal(self._next(), (1, cout), jnp.float32)
        scale = jnp.ones((1, cout), jnp.float32)
        return dict(w=w, scale=scale, bias=b, k=k)


def build_darknet53(pg):
    params = {"conv1": pg.conv_bn(3, 32, 3)}
    in_ch = [32]

    def stage(channels, blocks):
        st = {"ds": pg.conv_bn(in_ch[0], channels[1], 3)}
        in_ch[0] = channels[1]
        st["res"] = [
            dict(
                c1=pg.conv_bn(channels[1], channels[0], 1),
                c2=pg.conv_bn(channels[0], channels[1], 3),
            )
            for _ in range(blocks)
        ]
        return st

    params["layer1"] = stage([32, 64], 1)
    params["layer2"] = stage([64, 128], 2)
    params["layer3"] = stage([128, 256], 8)
    params["layer4"] = stage([256, 512], 8)
    params["layer5"] = stage([512, 1024], 4)
    return params


def build_conv_block(pg, filters_list, in_filters, out_filter):
    f0, f1 = filters_list
    return [
        pg.conv_bn(in_filters, f0, 1),
        pg.conv_bn(f0, f1, 3),
        pg.conv_bn(f1, f0, 1),
        pg.conv_bn(f0, f1, 3),
        pg.conv_bn(f1, f0, 1),
        pg.conv_bn(f0, f1, 3),
        pg.conv_bias(f1, out_filter, 1),
    ]


def build_yolo(key, config):
    pg = _ParamGen(key)
    out_filters = [64, 128, 256, 512, 1024]
    anchors = config["yolov3"]["anchors"]
    ncls = config["yolov3"]["classes_num"]
    f0 = len(anchors[0]) * (5 + ncls)
    f1 = len(anchors[1]) * (5 + ncls)
    f2 = len(anchors[2]) * (5 + ncls)
    p = {"backbone": build_darknet53(pg)}
    p["last_layer0"] = build_conv_block(pg, [512, 1024], out_filters[-1], f0)
    p["last_layer1_conv"] = pg.conv_bn(512, 256, 1)
    p["last_layer1"] = build_conv_block(pg, [256, 512], out_filters[-2] + 256, f1)
    p["last_layer2_conv"] = pg.conv_bn(256, 128, 1)
    p["last_layer2"] = build_conv_block(pg, [128, 256], out_filters[-3] + 128, f2)
    return p


# ---------------------------------------------------------------------------
# Forward passes
# ---------------------------------------------------------------------------
def darknet_forward(x, p):
    x = conv_forward(x, p["conv1"])

    def run_stage(x, st):
        x = conv_forward(x, st["ds"], stride=2)
        for rb in st["res"]:
            h = conv_forward(x, rb["c1"])
            x = conv_forward(h, rb["c2"], residual=x)   # residual fused in kernel
        return x

    x = run_stage(x, p["layer1"])
    x = run_stage(x, p["layer2"])
    out52 = run_stage(x, p["layer3"])
    out26 = run_stage(out52, p["layer4"])
    out13 = run_stage(out26, p["layer5"])
    return out52, out26, out13


def conv_block_branch(x, block):
    out_branch = None
    for i in range(6):
        x = conv_forward(x, block[i])
        if i == 4:
            out_branch = x
    x = conv_forward(x, block[6], apply_act=False)   # final conv: bias, no BN/act
    return x, out_branch


def yolo_forward(x, p):
    x52, x26, x13 = darknet_forward(x, p["backbone"])

    final13, branch13 = conv_block_branch(x13, p["last_layer0"])

    b26 = conv_forward(branch13, p["last_layer1_conv"])
    b26 = upsample2x(b26)
    b26 = jnp.concatenate([b26, x26], axis=-1)
    final26, branch26 = conv_block_branch(b26, p["last_layer1"])

    b52 = conv_forward(branch26, p["last_layer2_conv"])
    b52 = upsample2x(b52)
    b52 = jnp.concatenate([b52, x52], axis=-1)
    final52, _ = conv_block_branch(b52, p["last_layer2"])

    return final13, final26, final52


# ---------------------------------------------------------------------------
if __name__ == "__main__":
    config = {
        "yolov3": {
            "anchors": [
                [(116, 90), (156, 198), (373, 326)],
                [(30, 61), (62, 45), (59, 119)],
                [(10, 13), (16, 30), (33, 23)],
            ],
            "classes_num": 2,
        }
    }
    key = jax.random.PRNGKey(0)
    params = build_yolo(jax.random.fold_in(key, 1), config)

    # Small input: N=1, 3 channels, 32x32 (must be divisible by 32 for the 5 downsamples).
    x = jax.random.normal(jax.random.fold_in(key, 2), (1, 32, 32, 3), jnp.float32)

    f13, f26, f52 = yolo_forward(x, params)
    jax.block_until_ready((f13, f26, f52))

    fo = 3 * (5 + config["yolov3"]["classes_num"])
    assert f13.shape == (1, 1, 1, fo), f13.shape
    assert f26.shape == (1, 2, 2, fo), f26.shape
    assert f52.shape == (1, 4, 4, fo), f52.shape
    assert all(bool(jnp.all(jnp.isfinite(o))) for o in (f13, f26, f52))

    print("KERNEL_OK")
</pallas_src>

<mosaic_0001>
module attributes {stable_mosaic.version = 11 : i64} {
  func.func @_conv_mm_kernel(%arg0: i32, %arg1: i32, %arg2: i32, %arg3: memref<256x128xbf16, #tpu.memory_space<vmem>>, %arg4: memref<128x128xbf16, #tpu.memory_space<vmem>>, %arg5: memref<1x128xf32, #tpu.memory_space<vmem>>, %arg6: memref<256x128xf32, #tpu.memory_space<vmem>>, %arg7: memref<256x128xf32, #tpu.memory_space<vmem>>) attributes {dimension_semantics = [#tpu.dimension_semantics<parallel>, #tpu.dimension_semantics<parallel>, #tpu.dimension_semantics<arbitrary>], iteration_bounds = array<i64: 4, 1, 1>, scalar_prefetch = 0 : i64, scratch_operands = 1 : i64, tpu.core_type = #tpu.core_type<tc>, window_params = [{transform_indices = @transform_0, window_bounds = array<i64: 256, 128>}, {transform_indices = @transform_1, window_bounds = array<i64: 128, 128>}, {transform_indices = @transform_2, window_bounds = array<i64: 1, 128>}, {transform_indices = @transform_3, window_bounds = array<i64: 256, 128>}]} {
    %c0_i32 = arith.constant 0 : i32
    %0 = arith.cmpi eq, %arg2, %c0_i32 : i32
    %1 = arith.extui %0 : i1 to i32
    %c0_i32_0 = arith.constant 0 : i32
    %2 = arith.cmpi ne, %1, %c0_i32_0 : i32
    scf.if %2 {
      %cst_10 = arith.constant 0.000000e+00 : f32
      %12 = vector.broadcast %cst_10 : f32 to vector<256x128xf32>
      %c0_11 = arith.constant 0 : index
      %c0_12 = arith.constant 0 : index
      %13 = vector.load %arg7[%c0_11, %c0_12] : memref<256x128xf32, #tpu.memory_space<vmem>>, vector<256x128xf32>
      tpu.vector_store %arg7[%c0_11, %c0_12], %12 {strides = array<i32>} : memref<256x128xf32, #tpu.memory_space<vmem>>, vector<256x128xf32>,
    } else {
    }
    %c0 = arith.constant 0 : index
    %c0_1 = arith.constant 0 : index
    %3 = vector.load %arg7[%c0, %c0_1] : memref<256x128xf32, #tpu.memory_space<vmem>>, vector<256x128xf32>
    %c0_2 = arith.constant 0 : index
    %c0_3 = arith.constant 0 : index
    %4 = vector.load %arg3[%c0_2, %c0_3] : memref<256x128xbf16, #tpu.memory_space<vmem>>, vector<256x128xbf16>
    %c0_4 = arith.constant 0 : index
    %c0_5 = arith.constant 0 : index
    %5 = vector.load %arg4[%c0_4, %c0_5] : memref<128x128xbf16, #tpu.memory_space<vmem>>, vector<128x128xbf16>
    %cst = arith.constant dense<0.000000e+00> : vector<256x128xf32>
    %6 = tpu.matmul %4, %5, %cst {dimension_numbers = #tpu.dot_dimension_numbers<[1], [0], [0], [1], [0, 0, 1, 1], [], []>} : vector<256x128xbf16>, vector<128x128xbf16>, vector<256x128xf32> -> vector<256x128xf32>
    %7 = arith.addf %3, %6 : vector<256x128xf32>
    %c0_6 = arith.constant 0 : index
    %c0_7 = arith.constant 0 : index
    %8 = vector.load %arg7[%c0_6, %c0_7] : memref<256x128xf32, #tpu.memory_space<vmem>>, vector<256x128xf32>
    tpu.vector_store %arg7[%c0_6, %c0_7], %7 {strides = array<i32>} : memref<256x128xf32, #tpu.memory_space<vmem>>, vector<256x128xf32>,
    %c0_i32_8 = arith.constant 0 : i32
    %9 = arith.cmpi eq, %arg2, %c0_i32_8 : i32
    %10 = arith.extui %9 : i1 to i32
    %c0_i32_9 = arith.constant 0 : i32
    %11 = arith.cmpi ne, %10, %c0_i32_9 : i32
    scf.if %11 {
      %c0_10 = arith.constant 0 : index
      %c0_11 = arith.constant 0 : index
      %12 = vector.load %arg7[%c0_10, %c0_11] : memref<256x128xf32, #tpu.memory_space<vmem>>, vector<256x128xf32>
      %c0_12 = arith.constant 0 : index
      %c0_13 = arith.constant 0 : index
      %13 = vector.load %arg5[%c0_12, %c0_13] : memref<1x128xf32, #tpu.memory_space<vmem>>, vector<1x128xf32>
      %14 = vector.broadcast %13 : vector<1x128xf32> to vector<256x128xf32>
      %15 = arith.addf %12, %14 : vector<256x128xf32>
      %cst_14 = arith.constant 0.000000e+00 : f32
      %16 = vector.broadcast %cst_14 : f32 to vector<256x128xf32>
      %17 = arith.cmpf ogt, %15, %16 : vector<256x128xf32>
      %cst_15 = arith.constant 1.000000e-01 : f32
      %18 = vector.broadcast %cst_15 : f32 to vector<256x128xf32>
      %19 = arith.mulf %18, %15 : vector<256x128xf32>
      %20 = arith.select %17, %15, %19 : vector<256x128xi1>, vector<256x128xf32>
      %c0_16 = arith.constant 0 : index
      %c0_17 = arith.constant 0 : index
      %21 = vector.load %arg6[%c0_16, %c0_17] : memref<256x128xf32, #tpu.memory_space<vmem>>, vector<256x128xf32>
      tpu.vector_store %arg6[%c0_16, %c0_17], %20 {strides = array<i32>} : memref<256x128xf32, #tpu.memory_space<vmem>>, vector<256x128xf32>,
    } else {
    }
    return
  }
  func.func @transform_0(%arg0: i32, %arg1: i32, %arg2: i32) -> (i32, i32) {
    %c0_i32 = arith.constant 0 : i32
    return %arg0, %arg2 : i32, i32
  }
  func.func @transform_1(%arg0: i32, %arg1: i32, %arg2: i32) -> (i32, i32) {
    %c0_i32 = arith.constant 0 : i32
    return %arg2, %arg1 : i32, i32
  }
  func.func @transform_2(%arg0: i32, %arg1: i32, %arg2: i32) -> (i32, i32) {
    %c0_i32 = arith.constant 0 : i32
    %c0_i32_0 = arith.constant 0 : i32
    return %c0_i32, %arg1 : i32, i32
  }
  func.func @transform_3(%arg0: i32, %arg1: i32, %arg2: i32) -> (i32, i32) {
    %c0_i32 = arith.constant 0 : i32
    return %arg0, %arg1 : i32, i32
  }
}

</mosaic_0001>

<bundles_post_ra>
// kernel: tpu_custom_call.1
= control target key start
LH: loop header
LB: loop body
LE: loop exit
PB: predicated region body
PF: predicated region fallthrough
CT: control target
= control target key end

     0   :  { %8 = vsyncpa [#allocation4], 0  ;;  %s1865_s0 = inlined_call_operand.hbm [shape: bf16[1024,128], index: 0, kind: input, shape index: {}]   ;;  %s1866_s1 = inlined_call_operand.hbm [shape: bf16[128,128], index: 1, kind: input, shape index: {}]   ;;  %s1867_s2 = inlined_call_operand.hbm [shape: f32[1,128], index: 2, kind: input, shape index: {}]   ;;  %s1868_s3 = inlined_call_operand.hbm [shape: f32[1024,128], index: 3, kind: output, shape index: {}]  }
   0x1   :  { %10 = vsyncpa [#allocation4 + $0x1], 0 }
   0x2   :  { %11 = vsyncpa [#allocation7], 0 }
   0x3   :  { %12 = vsyncpa [#allocation5], 0 }
   0x4   :  { %14 = vsyncpa [#allocation5 + $0x1], 0  ;;  %s1524_s12 = smov 0   ;;  %s1526_s13 = smov 0  }
   0x5   :  { %s1528_s14 = smov 0   ;;  %s1530_s15 = smov 0  }
   0x6   :  { %s1532_s16 = smov 0   ;;  %s1534_s17 = smov 0  }
   0x7 LB: > { %s1077_s18 = sadd.s32 4294967295, %s1494_s17   ;;  %s1078_s19 = sadd.s32 4294967294, %s1494_s17   ;;  %s1494_s17 = sphi %s1534_s17, %s20_s17   ;;  %s1490_s16 = sphi %s1532_s16, %s1890_s16   ;;  %s1486_s15 = sphi %s1530_s15, %s1889_s15   ;;  %s1482_s14 = sphi %s1528_s14, %s1888_s14   ;;  %s1478_s13 = sphi %s1526_s13, %s1887_s13   ;;  %s1474_s12 = sphi %s1524_s12, %s1886_s12  }
   0x8   : > { %p61_p0 = scmp.ne.s32.totalorder %s1478_s13, %s1474_s12  ;;  %p1558_p1 = scmp.eq.s32.totalorder %s1077_s18, 0 }
   0x9   : > { %p1562_p2 = scmp.eq.s32.totalorder %s1077_s18, 3  ;;  %p147_p3 = scmp.eq.s32.totalorder %s1078_s19, 3 }
   0xa   : > { %s1873_s20 = scalar_select %p1558_p1, 1, 0 }
   0xb   : > { %s1874_s21 = scalar_select %p1562_p2, 1, 0 }
   0xc   : > { %p1568_p4 = por %p1558_p1, %p61_p0  ;;  %p1079_p5 = scmp.ge.s32.totalorder %s1494_s17, 1 }
   0xd   : > { %p1573_p6 = por %p147_p3, %p61_p0  ;;  %p154_p7 = scmp.lt.s32.totalorder %s1494_s17, 5 }
   0xe   : > { %s1875_s22 = scalar_select %p1568_p4, 1, 0 }
   0xf   : > { %s1876_s23 = scalar_select %p1573_p6, 1, 0 }
  0x10   : > { %p1578_p8 = pnand %p1079_p5, %p154_p7  ;;  %s1496_s25 = smov [#allocation6]  }
  0x11   : > { %s170_s26 = sshll.u32 %s1496_s25, 4  ;;  %s1497_s28 = smov [#allocation8]   ;;  %s171_s26 = int_to_ptr.vmem [resolvable:$true] %s170_s26 }
  0x12   : > { %s1877_s24 = scalar_select %p1578_p8, 1, 0 }
  0x13   : > { %p1223_p9 = pneg %p1578_p8  ;;  %s186_s29 = sshll.u32 %s1497_s28, 4  ;;  %s1590_s29 = int_to_ptr.vmem [resolvable:$true] %s186_s29 }
  0x14   : > { %s1322_s5 = scalar_lea.hbm %s1866_s1, 1024 }
  0x15   : > { %p1586_p10 = pnand %p1223_p9, %p1558_p1  ;;  %p1323_p11 = scmp.ne.s32.totalorder %s1866_s1, %s1322_s5 }
  0x16   : > { %p1329_p3 = scmp.lt.u32.totalorder %s1322_s5, %s1866_s1 }
  0x17   : > { %p1324_p12 = pneg %p1586_p10 }
  0x19   : > { %p1325_p13 = pnand %p1324_p12, %p1323_p11 }
  0x1b   : > { %p1326_p0 = pneg %p1325_p13 }
  0x1d   : > { %p1331_p5 = pnand %p1329_p3, %p1326_p0 }
  0x1f   : > { %1334 = shalt.err (!%p1331_p5)
}
  0x20   : > { %s1335_s10 = scalar_lea.vmem %s171_s26, 1024  ;;  %p1343_p1 = scmp.lt.s32.totalorder %s171_s26, %s171_s26 }
  0x21   : > { %p1336_p7 = scmp.ne.s32.totalorder %s171_s26, %s1335_s10  ;;  %p1344_p4 = scmp.lt.s32.totalorder %s1335_s10, %s1335_s10 }
  0x23   : > { %p1338_p9 = pnand %p1336_p7, %p1324_p12  ;;  %p1345_p8 = por %p1344_p4, %p1343_p1 }
  0x25   : > { %p1339_p6 = pneg %p1338_p9 }
  0x27   : > { %p1346_p2 = pnand %p1345_p8, %p1339_p6 }
  0x29   : > { %1349 = shalt.err (!%p1346_p2)
}
  0x2a   : > { %s1498_s11 = smov 64   ;;  %s1499_s18 = smov 4  }
  0x2b   : > { %1226 = dma.hbm_to_vmem [thread:$0]  (!%p1586_p10), %s1866_s1, 1024, %s171_s26, [#allocation7], %s1498_s11, %s1498_s11, %s1499_s18  }
  0x2c   : > { %s1350_s4 = scalar_lea.hbm %s1867_s2, 16 }
  0x2d   : > { %p1351_p1 = scmp.ne.s32.totalorder %s1867_s2, %s1350_s4  ;;  %p1357_p6 = scmp.lt.u32.totalorder %s1350_s4, %s1867_s2 }
  0x2f   : > { %p1353_p2 = pnand %p1351_p1, %p1324_p12 }
  0x31   : > { %p1354_p4 = pneg %p1353_p2 }
  0x33   : > { %p1359_p8 = pnand %p1357_p6, %p1354_p4 }
  0x35   : > { %1362 = shalt.err (!%p1359_p8)
}
  0x36   : > { %s1363_s26 = scalar_lea.vmem %s1590_s29, 16  ;;  %s1370_s9 = scalar_lea.vmem %s1590_s29, 32 }
  0x37   : > { %p1364_p11 = scmp.ne.s32.totalorder %s1590_s29, %s1363_s26  ;;  %p1371_p3 = scmp.lt.s32.totalorder %s1590_s29, %s1590_s29 }
  0x38   : > { %p1372_p5 = scmp.lt.s32.totalorder %s1370_s9, %s1363_s26 }
  0x39   : > { %p1366_p13 = pnand %p1364_p11, %p1324_p12 }
  0x3a   : > { %p1373_p7 = por %p1372_p5, %p1371_p3 }
  0x3b   : > { %p1367_p0 = pneg %p1366_p13 }
  0x3d   : > { %p1374_p9 = pnand %p1373_p7, %p1367_p0 }
  0x3f   : > { %1377 = shalt.err (!%p1374_p9)
}
  0x40   : > { %1229 = dma.hbm_to_vmem [thread:$0]  (!%p1586_p10), %s1867_s2, 16, %s1590_s29, [#allocation7]  }
  0x41   : > { %s39_s25 = sadd.s32 1, %s1490_s16  ;;  %s48_s28 = sadd.s32 1, %s1482_s14 }
  0x42   : > { %p41_p12 = scmp.ge.s32.totalorder %s39_s25, 4  ;;  %p55_p1 = scmp.ne.s32.totalorder %s1482_s14, %s1478_s13 }
  0x43   : > { %p56_p2 = scmp.eq.s32.totalorder %s1494_s17, 0  ;;  %p1240_p4 = scmp.lt.s32.totalorder %s1494_s17, 4 }
  0x44   : > { %s1892_s25 = smov (%p41_p12, %s39_s25), 0  ;;  %p1879_p8 = scmp.ne.s32.totalorder %s1874_s21, 0 }
  0x45   : > { %p57_p6 = por %p56_p2, %p55_p1  ;;  %s43_s30 = ssub.s32 %s1490_s16, %s1892_s25 }
  0x46   : > { %p1653_p11 = por %p1879_p8, %p55_p1  ;;  %s197_s4 = sand.u32 1, %s1482_s14  }
  0x47   : > { %p46_p13 = scmp.eq.s32.totalorder %s43_s30, 0  ;;  %s1083_s29 = sshll.u32 %s197_s4, 7 }
  0x48   : > { %s1121_s5 = sshll.u32 %s1490_s16, 11  ;;  %s201_s21 = scalar_lea.vmem [#allocation3], %s1083_s29 }
  0x49   : > { %s1662_s6 = scalar_select %p46_p13, %s1482_s14, %s48_s28  }
  0x4a   : > { %s1667_s26 = scalar_lea.hbm %s1865_s0, %s1121_s5  ;;  %s209_s9 = sshll.u32 %s201_s21, 4  ;;  %s1675_s9 = int_to_ptr.vmem [resolvable:$true] %s209_s9 }
  0x4b   : > { %p1671_p10 = pnand %p1240_p4, %p57_p6  ;;  %s1677_s19 = scalar_lea.sflag [#allocation4], %s197_s4 }
  0x4c   : > { %s1378_s28 = scalar_lea.hbm %s1667_s26, 2048  ;;  %s1383_s5 = scalar_lea.hbm %s1865_s0, 8192 }
  0x4d   : > { %p1379_p0 = scmp.ne.s32.totalorder %s1667_s26, %s1378_s28  ;;  %p1380_p3 = pneg %p1671_p10 }
  0x4e   : > { %p1384_p9 = scmp.lt.u32.totalorder %s1667_s26, %s1865_s0  ;;  %p1385_p12 = scmp.lt.u32.totalorder %s1383_s5, %s1378_s28 }
  0x4f   : > { %p1381_p5 = pnand %p1380_p3, %p1379_p0  ;;  %p1387_p2 = scmp.lt.u32.totalorder %s1378_s28, %s1667_s26 }
  0x50   : > { %p1386_p1 = por %p1385_p12, %p1384_p9 }
  0x51   : > { %p1382_p7 = pneg %p1381_p5 }
  0x52   : > { %p1388_p4 = por %p1387_p2, %p1386_p1 }
  0x54   : > { %p1389_p6 = pnand %p1388_p4, %p1382_p7 }
  0x56   : > { %1392 = shalt.err (!%p1389_p6)
}
  0x57   : > { %s1393_s4 = scalar_lea.vmem %s1675_s9, 2048  ;;  %s1500_s21 = smov [#allocation3]  }
  0x58   : > { %p1394_p8 = scmp.ne.s32.totalorder %s1675_s9, %s1393_s4  ;;  %s1398_s30 = sshll.u32 %s1500_s21, 4  ;;  %s1399_s30 = int_to_ptr.vmem [resolvable:$false] %s1398_s30 }
  0x59   : > { %s1400_s29 = scalar_lea.vmem %s1399_s30, 4096  ;;  %p1401_p5 = scmp.lt.s32.totalorder %s1675_s9, %s1399_s30 }
  0x5a   : > { %p1396_p13 = pnand %p1394_p8, %p1380_p3  ;;  %p1402_p9 = scmp.lt.s32.totalorder %s1400_s29, %s1393_s4 }
  0x5c   : > { %p1397_p0 = pneg %p1396_p13  ;;  %p1403_p12 = por %p1402_p9, %p1401_p5 }
  0x5e   : > { %p1404_p1 = pnand %p1403_p12, %p1397_p0 }
  0x60   : > { %1407 = shalt.err (!%p1404_p1)
}
  0x61   : > { %1233 = dma.hbm_to_vmem [thread:$0]  (!%p1671_p10), %s1667_s26, 2048, %s1675_s9, %s1677_s19, %s1498_s11, %s1498_s11, %s1499_s18  }
  0x62   : > { %p1882_p3 = scmp.ne.s32.totalorder %s1877_s24, 0 }
  0x63   : > { %s1711_s28 = sand.u32 (!%p1882_p3), 1, %s1478_s13   ;;  %p1883_p7 = scmp.ne.s32.totalorder (!%p1882_p3), %s1875_s22, 0 }
  0x64   : > { %221 = sbr.rel (%p1882_p3) target bundleno = 407 (0x197), region = 32  ;;  %s1087_s5 = sshll.u32 (!%p1882_p3), %s1711_s28, 7 }
  0x65   : > { %s224_s7 = scalar_lea.sflag (!%p1882_p3), [#allocation4], %s1711_s28  ;;  %s1715_s8 = scalar_lea.vmem (!%p1882_p3), [#allocation3], %s1087_s5 }
  0x6b   : > { %1461 = dma.done.wait (%p1883_p7), %s224_s7, 2048  }
  0x6c   : > { %1463 = vsyncadd (%p1883_p7), %s224_s7, 4294965248  ;;  %p1884_p10 = scmp.ne.s32.totalorder %s1873_s20, 0 }
  0x6e   : > { %1465 = dma.done.wait (%p1884_p10), [#allocation7], 1040  }
  0x6f   : > { %1467 = vsyncadd (%p1884_p10), [#allocation7], 4294966256  ;;  %v1298_v0 = vld [vmem:[#allocation6] sm:$0xff]   ;;  %v1299_v1 = vld [vmem:[#allocation6 + $0x8] sm:$0xff]   ;;  %s1090_s20 = sshll.u32 %s1711_s28, 8  ;;  %s1122_s24 = sshll.u32 %s1486_s15, 12 }
  0x70   : > { %1147 = vmatprep.subr.bf16.mxu0 %v1298_v0  ;;  %1195 = vmatprep.subr.bf16.mxu1 %v1298_v0  ;;  %v1300_v2 = vld [vmem:[#allocation6 + $0x10] sm:$0xff]   ;;  %v1301_v3 = vld [vmem:[#allocation6 + $0x18] sm:$0xff]   ;;  %v1306_v4 = vld [vmem:[%s1715_s8] sm:$0xff]   ;;  %s1750_s22 = scalar_lea.vmem [#allocation9], %s1090_s20  ;;  %s1811_s26 = scalar_lea.hbm %s1868_s3, %s1122_s24 }
  0x71   : > { %1148 = vmatpush3.bf16.msra.mxu0 %v1298_v0  ;;  %1203 = vmatpush3.bf16.msra.mxu1 %v1298_v0  ;;  %v1307_v5 = vld [vmem:[%s1715_s8 + $0x40] sm:$0xff]   ;;  %v1303_v7 = vld [vmem:[#allocation6 + $0x28] sm:$0xff]   ;;  %v1304_v8 = vld [vmem:[#allocation6 + $0x30] sm:$0xff]   ;;  %s964_s11 = sshll.u32 %s1750_s22, 4  ;;  %s950_s9 = scalar_lea.sflag [#allocation5], %s1711_s28  ;;  %s1813_s11 = int_to_ptr.vmem [resolvable:$true] %s964_s11 }
  0x72   : > { %1149 = vmatprep.subr.bf16.mxu0 %v1299_v1  ;;  %1196 = vmatprep.subr.bf16.mxu1 %v1299_v1  ;;  %v1302_v6 = vld [vmem:[#allocation6 + $0x20] sm:$0xff]   ;;  %v1305_v9 = vld [vmem:[#allocation6 + $0x38] sm:$0xff]   ;;  %v1308_v10 = vld [vmem:[%s1715_s8 + $0x8] sm:$0xff]   ;;  %s1408_s10 = scalar_lea.vmem %s1813_s11, 4096  ;;  %s1501_s19 = smov [#allocation9]  }
  0x73   : > { %1163 = vmatprep.mubr.bf16.mxu0 %v1306_v4  ;;  %1179 = vmatprep.mubr.bf16.mxu1 %v1307_v5  ;;  %v1309_v11 = vld [vmem:[%s1715_s8 + $0x48] sm:$0xff]   ;;  %v1310_v12 = vld [vmem:[%s1715_s8 + $0x10] sm:$0xff]   ;;  %v1312_v14 = vld [vmem:[%s1715_s8 + $0x18] sm:$0xff]   ;;  %p1409_p2 = scmp.ne.s32.totalorder %s1813_s11, %s1408_s10  ;;  %s1412_s4 = sshll.u32 %s1501_s19, 4  ;;  %s1413_s4 = int_to_ptr.vmem [resolvable:$false] %s1412_s4 }
  0x74   : > { %v1311_v13 = vld [vmem:[%s1715_s8 + $0x50] sm:$0xff]   ;;  %v1313_v15 = vld [vmem:[%s1715_s8 + $0x58] sm:$0xff]   ;;  %v1314_v16 = vld [vmem:[%s1715_s8 + $0x20] sm:$0xff]   ;;  %s1414_s21 = scalar_lea.vmem %s1413_s4, 8192  ;;  %p1415_p8 = scmp.lt.s32.totalorder %s1813_s11, %s1413_s4 }
  0x75   : > { %1150 = vmatpush3.bf16.msra.mxu0 %v1299_v1  ;;  %1204 = vmatpush3.bf16.msra.mxu1 %v1299_v1  ;;  %v1315_v17 = vld [vmem:[%s1715_s8 + $0x60] sm:$0xff]   ;;  %v1316_v18 = vld [vmem:[%s1715_s8 + $0x28] sm:$0xff]   ;;  %v1318_v20 = vld [vmem:[%s1715_s8 + $0x30] sm:$0xff]   ;;  %p1410_p4 = pnand %p1409_p2, %p1653_p11  ;;  %p1416_p13 = scmp.lt.s32.totalorder %s1414_s21, %s1408_s10 }
  0x76   : > { %1151 = vmatprep.subr.bf16.mxu0 %v1300_v2  ;;  %1197 = vmatprep.subr.bf16.mxu1 %v1300_v2  ;;  %v1317_v19 = vld [vmem:[%s1715_s8 + $0x68] sm:$0xff]   ;;  %v1319_v21 = vld [vmem:[%s1715_s8 + $0x70] sm:$0xff]   ;;  %v1320_v22 = vld [vmem:[%s1715_s8 + $0x38] sm:$0xff]  }
  0x77   : > { %v1321_v23 = vld [vmem:[%s1715_s8 + $0x78] sm:$0xff]   ;;  %v1741_v24 = vld [vmem:[#allocation8] ss:$0 sm:$0xff]  ;;  %p1411_p6 = pneg %p1410_p4  ;;  %p1417_p0 = por %p1416_p13, %p1415_p8 }
  0x79   : > { %1152 = vmatpush3.bf16.msra.mxu0 %v1300_v2  ;;  %1205 = vmatpush3.bf16.msra.mxu1 %v1300_v2  ;;  %p1418_p5 = pnand %p1417_p0, %p1411_p6 }
  0x7a   : > { %1153 = vmatprep.subr.bf16.mxu0 %v1301_v3  ;;  %1198 = vmatprep.subr.bf16.mxu1 %v1301_v3 }
  0x7d   : > { %1154 = vmatpush3.bf16.msra.mxu0 %v1301_v3  ;;  %1206 = vmatpush3.bf16.msra.mxu1 %v1301_v3 }
  0x7e   : > { %1155 = vmatprep.subr.bf16.mxu0 %v1302_v6  ;;  %1199 = vmatprep.subr.bf16.mxu1 %v1302_v6 }
  0x81   : > { %1156 = vmatpush3.bf16.msra.mxu0 %v1302_v6  ;;  %1207 = vmatpush3.bf16.msra.mxu1 %v1302_v6 }
  0x82   : > { %1157 = vmatprep.subr.bf16.mxu0 %v1303_v7  ;;  %1200 = vmatprep.subr.bf16.mxu1 %v1303_v7 }
  0x85   : > { %1158 = vmatpush3.bf16.msra.mxu0 %v1303_v7  ;;  %1208 = vmatpush3.bf16.msra.mxu1 %v1303_v7 }
  0x86   : > { %1159 = vmatprep.subr.bf16.mxu0 %v1304_v8  ;;  %1201 = vmatprep.subr.bf16.mxu1 %v1304_v8 }
  0x89   : > { %1160 = vmatpush3.bf16.msra.mxu0 %v1304_v8  ;;  %1209 = vmatpush3.bf16.msra.mxu1 %v1304_v8 }
  0x8a   : > { %1161 = vmatprep.subr.bf16.mxu0 %v1305_v9  ;;  %1202 = vmatprep.subr.bf16.mxu1 %v1305_v9 }
  0x8d   : > { %1162 = vmatpush3.bf16.msra.mxu0 %v1305_v9  ;;  %1210 = vmatpush3.bf16.msra.mxu1 %v1305_v9 }
  0x90   : > { %1164 = vmatmul.mubr.bf16.vlgmr.msra.gmra.mrb[0].mxu0 %v1308_v10  ;;  %1180 = vmatmul.mubr.bf16.vlgmr.msra.gmra.mrb[0].mxu1 %v1309_v11 }
  0x91   : > { %1167 = vmatprep.mubr.bf16.mxu0 %v1310_v12  ;;  %1183 = vmatprep.mubr.bf16.mxu1 %v1311_v13 }
  0x98   : > { %1168 = vmatmul.mubr.bf16.gmra.mrb[4].mxu0 %v1312_v14  ;;  %1184 = vmatmul.mubr.bf16.gmra.mrb[4].mxu1 %v1313_v15 }
  0x99   : > { %1171 = vmatprep.mubr.bf16.mxu0 %v1314_v16  ;;  %1187 = vmatprep.mubr.bf16.mxu1 %v1315_v17 }
  0xa0   : > { %1172 = vmatmul.mubr.bf16.gmra.mrb[8].mxu0 %v1316_v18  ;;  %1188 = vmatmul.mubr.bf16.gmra.mrb[8].mxu1 %v1317_v19 }
  0xa1   : > { %1175 = vmatprep.mubr.bf16.mxu0 %v1318_v20  ;;  %1191 = vmatprep.mubr.bf16.mxu1 %v1319_v21 }
  0xa8   : > { %1176 = vmatmul.mubr.bf16.gmra.mrb[12].mxu0 %v1320_v22  ;;  %1192 = vmatmul.mubr.bf16.gmra.mrb[12].mxu1 %v1321_v23 }
 0x163   : > { %v1165_v25 = vpop.f32.mrb[0].mxu0  ;;  %v1181_v26 = vpop.f32.mrb[0].mxu1 }
 0x164   : > { %v791_v27 = vadd.f32 %v1165_v25, %v1741_v24  ;;  %v807_v28 = vadd.f32 %v1181_v26, %v1741_v24  ;;  %v556_v29 = vpop.f32.mrb[1].mxu0  ;;  %v620_v30 = vpop.f32.mrb[1].mxu1 }
 0x165   : > { %v789_v31 = vadd.f32 %v1741_v24, %v556_v29  ;;  %v805_v32 = vadd.f32 %v1741_v24, %v620_v30  ;;  %v1166_v33 = vpop.f32.mrb[2].mxu0  ;;  %v1182_v34 = vpop.f32.mrb[2].mxu1 }
 0x166   : > { %vm823_vm0 = vcmp.gt.f32.partialorder %v791_v27, 0.0  ;;  %v855_v35 = vmul.f32 0.1, %v791_v27  ;;  %vm839_vm1 = vcmp.gt.f32.partialorder %v807_v28, 0.0  ;;  %v871_v36 = vmul.f32 0.1, %v807_v28 }
 0x167   : > { %vm821_vm2 = vcmp.gt.f32.partialorder %v789_v31, 0.0  ;;  %v853_v37 = vmul.f32 0.1, %v789_v31  ;;  %vm837_vm3 = vcmp.gt.f32.partialorder %v805_v32, 0.0  ;;  %v869_v38 = vmul.f32 0.1, %v805_v32 }
 0x168   : > { %v887_v39 = vsel %vm823_vm0, %v791_v27, %v855_v35  ;;  %v903_v40 = vsel %vm839_vm1, %v807_v28, %v871_v36  ;;  %v792_v41 = vadd.f32 %v1166_v33, %v1741_v24  ;;  %v808_v42 = vadd.f32 %v1182_v34, %v1741_v24  ;;  %v559_v43 = vpop.f32.mrb[3].mxu0  ;;  %v623_v44 = vpop.f32.mrb[3].mxu1 }
 0x169   : > { %919 = vst [vmem:[%s1750_s22 + $0x10] sm:$0xff] %v887_v39  ;;  %935 = vst [vmem:[%s1750_s22 + $0x90] sm:$0xff] %v903_v40  ;;  %v885_v45 = vsel %vm821_vm2, %v789_v31, %v853_v37  ;;  %v901_v46 = vsel %vm837_vm3, %v805_v32, %v869_v38  ;;  %v790_v47 = vadd.f32 %v1741_v24, %v559_v43 }
 0x16a   : > { %v806_v48 = vadd.f32 %v1741_v24, %v623_v44  ;;  %917 = vst [vmem:[%s1750_s22] sm:$0xff] %v885_v45  ;;  %933 = vst [vmem:[%s1750_s22 + $0x80] sm:$0xff] %v901_v46  ;;  %vm824_vm4 = vcmp.gt.f32.partialorder %v792_v41, 0.0  ;;  %v856_v49 = vmul.f32 0.1, %v792_v41  ;;  %vm840_vm5 = vcmp.gt.f32.partialorder %v808_v42, 0.0 }
 0x16b   : > { %v872_v50 = vmul.f32 0.1, %v808_v42  ;;  %vm822_vm6 = vcmp.gt.f32.partialorder %v790_v47, 0.0  ;;  %v854_v51 = vmul.f32 0.1, %v790_v47  ;;  %v1169_v55 = vpop.f32.mrb[4].mxu0 }
 0x16c   : > { %vm838_vm7 = vcmp.gt.f32.partialorder %v806_v48, 0.0  ;;  %v870_v52 = vmul.f32 0.1, %v806_v48  ;;  %v888_v53 = vsel %vm824_vm4, %v792_v41, %v856_v49  ;;  %v1185_v56 = vpop.f32.mrb[4].mxu1  ;;  %v795_v59 = vadd.f32 %v1169_v55, %v1741_v24  ;;  %v572_v61 = vpop.f32.mrb[5].mxu0 }
 0x16d   : > { %v904_v54 = vsel %vm840_vm5, %v808_v42, %v872_v50  ;;  %920 = vst [vmem:[%s1750_s22 + $0x18] sm:$0xff] %v888_v53  ;;  %v886_v57 = vsel %vm822_vm6, %v790_v47, %v854_v51  ;;  %v811_v60 = vadd.f32 %v1185_v56, %v1741_v24  ;;  %v636_v62 = vpop.f32.mrb[5].mxu1  ;;  %v793_v63 = vadd.f32 %v1741_v24, %v572_v61  ;;  %v1170_v1 = vpop.f32.mrb[6].mxu0 }
 0x16e   : > { %936 = vst [vmem:[%s1750_s22 + $0x98] sm:$0xff] %v904_v54  ;;  %v902_v58 = vsel %vm838_vm7, %v806_v48, %v870_v52  ;;  %918 = vst [vmem:[%s1750_s22 + $0x8] sm:$0xff] %v886_v57  ;;  %v809_v0 = vadd.f32 %v1741_v24, %v636_v62  ;;  %v1186_v2 = vpop.f32.mrb[6].mxu1  ;;  %vm827_vm8 = vcmp.gt.f32.partialorder %v795_v59, 0.0  ;;  %v859_v3 = vmul.f32 0.1, %v795_v59 }
 0x16f   : > { %934 = vst [vmem:[%s1750_s22 + $0x88] sm:$0xff] %v902_v58  ;;  %vm843_vm9 = vcmp.gt.f32.partialorder %v811_v60, 0.0  ;;  %v875_v4 = vmul.f32 0.1, %v811_v60  ;;  %vm825_vm10 = vcmp.gt.f32.partialorder %v793_v63, 0.0  ;;  %v796_v9 = vadd.f32 %v1170_v1, %v1741_v24  ;;  %v575_v11 = vpop.f32.mrb[7].mxu0 }
 0x170   : > { %v857_v5 = vmul.f32 0.1, %v793_v63  ;;  %vm841_vm11 = vcmp.gt.f32.partialorder %v809_v0, 0.0  ;;  %v873_v6 = vmul.f32 0.1, %v809_v0  ;;  %v891_v7 = vsel %vm827_vm8, %v795_v59, %v859_v3  ;;  %v639_v12 = vpop.f32.mrb[7].mxu1 }
 0x171   : > { %v907_v8 = vsel %vm843_vm9, %v811_v60, %v875_v4  ;;  %v812_v10 = vadd.f32 %v1186_v2, %v1741_v24  ;;  %923 = vst [vmem:[%s1750_s22 + $0x30] sm:$0xff] %v891_v7  ;;  %v794_v15 = vadd.f32 %v1741_v24, %v575_v11  ;;  %v810_v16 = vadd.f32 %v1741_v24, %v639_v12 }
 0x172   : > { %939 = vst [vmem:[%s1750_s22 + $0xb0] sm:$0xff] %v907_v8  ;;  %v889_v13 = vsel %vm825_vm10, %v793_v63, %v857_v5  ;;  %v905_v14 = vsel %vm841_vm11, %v809_v0, %v873_v6  ;;  %vm828_vm12 = vcmp.gt.f32.partialorder %v796_v9, 0.0  ;;  %v860_v17 = vmul.f32 0.1, %v796_v9 }
 0x173   : > { %921 = vst [vmem:[%s1750_s22 + $0x20] sm:$0xff] %v889_v13  ;;  %937 = vst [vmem:[%s1750_s22 + $0xa0] sm:$0xff] %v905_v14  ;;  %vm844_vm13 = vcmp.gt.f32.partialorder %v812_v10, 0.0  ;;  %v876_v18 = vmul.f32 0.1, %v812_v10  ;;  %vm826_vm14 = vcmp.gt.f32.partialorder %v794_v15, 0.0 }
 0x174   : > { %v858_v19 = vmul.f32 0.1, %v794_v15  ;;  %vm842_vm15 = vcmp.gt.f32.partialorder %v810_v16, 0.0  ;;  %v874_v20 = vmul.f32 0.1, %v810_v16  ;;  %v892_v21 = vsel %vm828_vm12, %v796_v9, %v860_v17  ;;  %v1173_v23 = vpop.f32.mrb[8].mxu0 }
 0x175   : > { %v908_v22 = vsel %vm844_vm13, %v812_v10, %v876_v18  ;;  %v1189_v25 = vpop.f32.mrb[8].mxu1  ;;  %924 = vst [vmem:[%s1750_s22 + $0x38] sm:$0xff] %v892_v21  ;;  %v799_v28 = vadd.f32 %v1173_v23, %v1741_v24  ;;  %v588_v30 = vpop.f32.mrb[9].mxu0 }
 0x176   : > { %940 = vst [vmem:[%s1750_s22 + $0xb8] sm:$0xff] %v908_v22  ;;  %v890_v26 = vsel %vm826_vm14, %v794_v15, %v858_v19  ;;  %v906_v27 = vsel %vm842_vm15, %v810_v16, %v874_v20  ;;  %v815_v29 = vadd.f32 %v1189_v25, %v1741_v24  ;;  %v652_v31 = vpop.f32.mrb[9].mxu1  ;;  %v797_v32 = vadd.f32 %v1741_v24, %v588_v30  ;;  %v1174_v34 = vpop.f32.mrb[10].mxu0 }
 0x177   : > { %922 = vst [vmem:[%s1750_s22 + $0x28] sm:$0xff] %v890_v26  ;;  %938 = vst [vmem:[%s1750_s22 + $0xa8] sm:$0xff] %v906_v27  ;;  %v813_v33 = vadd.f32 %v1741_v24, %v652_v31  ;;  %v1190_v35 = vpop.f32.mrb[10].mxu1  ;;  %vm831_vm0 = vcmp.gt.f32.partialorder %v799_v28, 0.0  ;;  %v863_v36 = vmul.f32 0.1, %v799_v28  ;;  %v800_v42 = vadd.f32 %v1174_v34, %v1741_v24 }
 0x178   : > { %vm847_vm1 = vcmp.gt.f32.partialorder %v815_v29, 0.0  ;;  %v879_v37 = vmul.f32 0.1, %v815_v29  ;;  %vm829_vm2 = vcmp.gt.f32.partialorder %v797_v32, 0.0  ;;  %v861_v38 = vmul.f32 0.1, %v797_v32 }
 0x179   : > { %vm845_vm3 = vcmp.gt.f32.partialorder %v813_v33, 0.0  ;;  %v877_v39 = vmul.f32 0.1, %v813_v33  ;;  %v895_v40 = vsel %vm831_vm0, %v799_v28, %v863_v36  ;;  %v816_v43 = vadd.f32 %v1190_v35, %v1741_v24  ;;  %v591_v44 = vpop.f32.mrb[11].mxu0  ;;  %v655_v45 = vpop.f32.mrb[11].mxu1 }
 0x17a   : > { %v911_v41 = vsel %vm847_vm1, %v815_v29, %v879_v37  ;;  %927 = vst [vmem:[%s1750_s22 + $0x50] sm:$0xff] %v895_v40  ;;  %v893_v46 = vsel %vm829_vm2, %v797_v32, %v861_v38  ;;  %v798_v48 = vadd.f32 %v1741_v24, %v591_v44  ;;  %v814_v49 = vadd.f32 %v1741_v24, %v655_v45 }
 0x17b   : > { %943 = vst [vmem:[%s1750_s22 + $0xd0] sm:$0xff] %v911_v41  ;;  %v909_v47 = vsel %vm845_vm3, %v813_v33, %v877_v39  ;;  %v1177_v50 = vpop.f32.mrb[12].mxu0  ;;  %v1193_v51 = vpop.f32.mrb[12].mxu1  ;;  %925 = vst [vmem:[%s1750_s22 + $0x40] sm:$0xff] %v893_v46  ;;  %vm832_vm4 = vcmp.gt.f32.partialorder %v800_v42, 0.0  ;;  %vm848_vm5 = vcmp.gt.f32.partialorder %v816_v43, 0.0 }
 0x17c   : > { %941 = vst [vmem:[%s1750_s22 + $0xc0] sm:$0xff] %v909_v47  ;;  %v864_v52 = vmul.f32 0.1, %v800_v42  ;;  %v880_v53 = vmul.f32 0.1, %v816_v43  ;;  %vm830_vm6 = vcmp.gt.f32.partialorder %v798_v48, 0.0  ;;  %v803_v58 = vadd.f32 %v1177_v50, %v1741_v24 }
 0x17d   : > { %v862_v54 = vmul.f32 0.1, %v798_v48  ;;  %vm846_vm7 = vcmp.gt.f32.partialorder %v814_v49, 0.0  ;;  %v878_v55 = vmul.f32 0.1, %v814_v49  ;;  %v819_v59 = vadd.f32 %v1193_v51, %v1741_v24  ;;  %v604_v60 = vpop.f32.mrb[13].mxu0 }
 0x17e   : > { %v896_v56 = vsel %vm832_vm4, %v800_v42, %v864_v52  ;;  %v912_v57 = vsel %vm848_vm5, %v816_v43, %v880_v53  ;;  %v668_v61 = vpop.f32.mrb[13].mxu1  ;;  %v801_v0 = vadd.f32 %v1741_v24, %v604_v60  ;;  %v1178_v2 = vpop.f32.mrb[14].mxu0  ;;  %vm835_vm8 = vcmp.gt.f32.partialorder %v803_v58, 0.0 }
 0x17f   : > { %928 = vst [vmem:[%s1750_s22 + $0x58] sm:$0xff] %v896_v56  ;;  %944 = vst [vmem:[%s1750_s22 + $0xd8] sm:$0xff] %v912_v57  ;;  %v894_v62 = vsel %vm830_vm6, %v798_v48, %v862_v54  ;;  %v910_v63 = vsel %vm846_vm7, %v814_v49, %v878_v55  ;;  %v817_v1 = vadd.f32 %v1741_v24, %v668_v61  ;;  %v1194_v3 = vpop.f32.mrb[14].mxu1  ;;  %v867_v4 = vmul.f32 0.1, %v803_v58  ;;  %v607_v12 = vpop.f32.mrb[15].mxu0 }
 0x180   : > { %926 = vst [vmem:[%s1750_s22 + $0x48] sm:$0xff] %v894_v62  ;;  %942 = vst [vmem:[%s1750_s22 + $0xc8] sm:$0xff] %v910_v63  ;;  %vm851_vm9 = vcmp.gt.f32.partialorder %v819_v59, 0.0  ;;  %v883_v5 = vmul.f32 0.1, %v819_v59  ;;  %vm833_vm10 = vcmp.gt.f32.partialorder %v801_v0, 0.0  ;;  %v804_v10 = vadd.f32 %v1178_v2, %v1741_v24 }
 0x181   : > { %v865_v6 = vmul.f32 0.1, %v801_v0  ;;  %vm849_vm11 = vcmp.gt.f32.partialorder %v817_v1, 0.0  ;;  %v881_v7 = vmul.f32 0.1, %v817_v1  ;;  %v899_v8 = vsel %vm835_vm8, %v803_v58, %v867_v4  ;;  %v671_v13 = vpop.f32.mrb[15].mxu1 }
 0x182   : > { %v915_v9 = vsel %vm851_vm9, %v819_v59, %v883_v5  ;;  %v820_v11 = vadd.f32 %v1194_v3, %v1741_v24  ;;  %931 = vst [vmem:[%s1750_s22 + $0x70] sm:$0xff] %v899_v8  ;;  %v802_v16 = vadd.f32 %v1741_v24, %v607_v12  ;;  %v818_v17 = vadd.f32 %v1741_v24, %v671_v13 }
 0x183   : > { %947 = vst [vmem:[%s1750_s22 + $0xf0] sm:$0xff] %v915_v9  ;;  %v897_v14 = vsel %vm833_vm10, %v801_v0, %v865_v6  ;;  %v913_v15 = vsel %vm849_vm11, %v817_v1, %v881_v7  ;;  %vm836_vm12 = vcmp.gt.f32.partialorder %v804_v10, 0.0  ;;  %v868_v18 = vmul.f32 0.1, %v804_v10 }
 0x184   : > { %929 = vst [vmem:[%s1750_s22 + $0x60] sm:$0xff] %v897_v14  ;;  %945 = vst [vmem:[%s1750_s22 + $0xe0] sm:$0xff] %v913_v15  ;;  %vm852_vm13 = vcmp.gt.f32.partialorder %v820_v11, 0.0  ;;  %v884_v19 = vmul.f32 0.1, %v820_v11  ;;  %vm834_vm14 = vcmp.gt.f32.partialorder %v802_v16, 0.0 }
 0x185   : > { %v866_v20 = vmul.f32 0.1, %v802_v16  ;;  %vm850_vm15 = vcmp.gt.f32.partialorder %v818_v17, 0.0  ;;  %v882_v21 = vmul.f32 0.1, %v818_v17  ;;  %v900_v24 = vsel %vm836_vm12, %v804_v10, %v868_v18 }
 0x186   : > { %v916_v22 = vsel %vm852_vm13, %v820_v11, %v884_v19  ;;  %932 = vst [vmem:[%s1750_s22 + $0x78] sm:$0xff] %v900_v24 }
 0x187   : > { %948 = vst [vmem:[%s1750_s22 + $0xf8] sm:$0xff] %v916_v22  ;;  %v898_v23 = vsel %vm834_vm14, %v802_v16, %v866_v20  ;;  %v914_v25 = vsel %vm850_vm15, %v818_v17, %v882_v21 }
 0x188   : > { %930 = vst [vmem:[%s1750_s22 + $0x68] sm:$0xff] %v898_v23  ;;  %946 = vst [vmem:[%s1750_s22 + $0xe8] sm:$0xff] %v914_v25 }
 0x189   : > { %1421 = shalt.err (!%p1418_p5)
}
 0x18a   : > { %s1422_s30 = scalar_lea.hbm %s1811_s26, 4096  ;;  %s1426_s7 = scalar_lea.hbm %s1868_s3, 16384 }
 0x18b   : > { %p1423_p9 = scmp.ne.s32.totalorder %s1811_s26, %s1422_s30  ;;  %p1427_p3 = scmp.lt.u32.totalorder %s1811_s26, %s1868_s3 }
 0x18c   : > { %p1428_p7 = scmp.lt.u32.totalorder %s1426_s7, %s1422_s30  ;;  %p1430_p2 = scmp.lt.u32.totalorder %s1422_s30, %s1811_s26 }
 0x18d   : > { %p1424_p12 = pnand %p1423_p9, %p1653_p11 }
 0x18e   : > { %p1429_p10 = por %p1428_p7, %p1427_p3 }
 0x18f   : > { %p1425_p1 = pneg %p1424_p12 }
 0x190   : > { %p1431_p4 = por %p1430_p2, %p1429_p10 }
 0x192   : > { %p1432_p6 = pnand %p1431_p4, %p1425_p1 }
 0x194   : > { %1435 = shalt.err (!%p1432_p6)
}
 0x195   : > { %s1502_s22 = smov 128   ;;  %s1503_s24 = smov 8  }
 0x196   : > { %1221 = dma.vmem_to_hbm [thread:$0]  (%p1653_p11), %s1813_s11, 4096, %s1811_s26, %s950_s9, %s1502_s22, %s1502_s22, %s1503_s24  }
 0x197 PF: > { %p1243_p8 = scmp.ge.s32.totalorder %s1494_s17, 2  ;;  %s979_s15 = sand.u32 1, %s1474_s12  }
 0x198   : > { %p1885_p13 = scmp.ne.s32.totalorder %s1876_s23, 0  ;;  %s980_s18 = scalar_lea.sflag [#allocation5], %s979_s15 }
 0x19a   : > { %p1235_p0 = pnand %p1243_p8, %p1885_p13 }
 0x19c   : > { %1469 = dma.done.wait (!%p1235_p0), %s980_s18, 4096  }
 0x19d   : > { %1471 = vsyncadd (!%p1235_p0), %s980_s18, 4294963200  ;;  %s20_s17 = sadd.s32 1, %s1494_s17   ;;  %s1886_s12 = smov %s1478_s13 }
 0x19e   : > { %p17_p5 = scmp.ge.s32.totalorder %s20_s17, 6   ;;  %s1887_s13 = smov %s1482_s14 }
 0x19f   : > { %s1888_s14 = smov %s1662_s6  ;;  %s1889_s15 = smov %s1490_s16 }
 0x1a0   : > { %s1890_s16 = smov %s1892_s25  ;;  %19 = sbr.rel (!%p17_p5) target bundleno = 7 (0x7), region = 95 }
 0x1a7   :  { %985 = vsyncpa [#allocation4], 1 }
 0x1a8   :  { %987 = vsyncpa [#allocation4 + $0x1], 1 }
 0x1a9   :  { %988 = vsyncpa [#allocation7], 1 }
 0x1aa   :  { %989 = vsyncpa [#allocation5], 1 }
 0x1ab   :  { %991 = vsyncpa [#allocation5 + $0x1], 1 }

</bundles_post_ra>
